<compile_context>
chip_gen: v5e
topology: v5e:2x2
jax: 0.10.0
libtpu: 0.0.40
codegen_flags: <defaults>
</compile_context>

<pallas_src>
import jax
import jax.numpy as jnp
from jax.experimental import pallas as pl
from jax.experimental.pallas import tpu as pltpu


def _fusion_kernel(v_ref, qmid_ref, wimg_ref, w1_ref, b1_ref, o_ref):
    # v_ref:    (1, V, T)    one batch element, one spatial tile (channels-first)
    # qmid_ref: (1, mid, 1)  precomputed ques_linear output for this batch element
    # wimg_ref: (mid, V)     img_conv weight (1x1 conv == matmul), no bias
    # w1_ref:   (G, mid)     conv1 weight (1x1 conv == matmul)
    # b1_ref:   (G, 1)       conv1 bias (broadcast over HW)
    # o_ref:    (1, G, T)
    v = v_ref[0]                                                       # (V, T)

    # img_conv: 1x1 conv, no bias -> channel matmul with HW on the lane axis
    x = jnp.dot(wimg_ref[...], v, preferred_element_type=jnp.float32)  # (mid, T)

    # tile(q, v) + relu(v + q): broadcast the (mid, 1) question column over HW
    x = jnp.maximum(x + qmid_ref[0], 0.0)                              # (mid, T)

    # conv1: 1x1 conv with bias
    out = jnp.dot(w1_ref[...], x, preferred_element_type=jnp.float32)  # (G, T)
    out = out + b1_ref[...]

    o_ref[0] = out.astype(o_ref.dtype)


def _pick_hw_tile(hw, max_tile=2048):
    """Largest HW tile that divides HW, is a multiple of 128, and <= max_tile.

    Falls back to the full extent (always legal as a block dim)."""
    if hw <= max_tile:
        return hw
    t = (max_tile // 128) * 128
    while t >= 128:
        if hw % t == 0:
            return t
        t -= 128
    return hw


def fusion_forward(v_nchw, q, w_img, w_q, b_q, w1, b1):
    """v_nchw: (N, V, H, W) float32, q: (N, Q) float32.

    w_img: (mid, V)   -- nn.Conv2d(v, mid, 1, bias=False).weight squeezed
    w_q:   (mid, Q)   -- nn.Linear(q, mid).weight
    b_q:   (mid,)
    w1:    (G, mid)   -- nn.Conv2d(mid, glimpses, 1).weight squeezed
    b1:    (G,)
    returns: (N, G, H, W) float32
    """
    N, V, H, W = v_nchw.shape
    mid = w_img.shape[0]
    G = w1.shape[0]
    HW = H * W

    # channels-first, flatten spatial: pure reshape, no HBM transpose.
    v_flat = v_nchw.reshape(N, V, HW)

    # Hoist ques_linear out of the kernel: one batched XLA GEMM over N.
    q_mid = (q @ w_q.T + b_q).reshape(N, mid, 1).astype(jnp.float32)   # (N, mid, 1)
    b1c = b1.reshape(G, 1)

    tile_hw = _pick_hw_tile(HW)
    n_hw_tiles = HW // tile_hw
    grid = (N, n_hw_tiles)

    # Advisory cost for XLA scheduling around the custom call.
    flops = 2 * N * HW * mid * (V + G)
    bytes_accessed = 4 * (N * HW * (V + G) + N * mid + mid * V + G * mid + G)
    cost = pl.CostEstimate(flops=flops, transcendentals=0,
                           bytes_accessed=bytes_accessed)

    # Per-step footprint (double-buffered in/out tiles + resident weights),
    # with generous headroom; stays well inside v7x's 64 MiB physical VMEM.
    per_step_bytes = 4 * tile_hw * (V + G)
    vmem_limit = min(64 * 1024 * 1024,
                     max(8 * 1024 * 1024, 8 * per_step_bytes))

    out_flat = pl.pallas_call(
        _fusion_kernel,
        out_shape=jax.ShapeDtypeStruct((N, G, HW), jnp.float32),
        grid_spec=pltpu.PrefetchScalarGridSpec(
            num_scalar_prefetch=0,
            grid=grid,
            in_specs=[
                pl.BlockSpec((1, V, tile_hw), lambda n, h: (n, 0, h)),
                pl.BlockSpec((1, mid, 1), lambda n, h: (n, 0, 0)),
                pl.BlockSpec((mid, V), lambda n, h: (0, 0)),
                pl.BlockSpec((G, mid), lambda n, h: (0, 0)),
                pl.BlockSpec((G, 1), lambda n, h: (0, 0)),
            ],
            out_specs=pl.BlockSpec((1, G, tile_hw), lambda n, h: (n, 0, h)),
        ),
        compiler_params=pltpu.CompilerParams(
            dimension_semantics=("parallel", "parallel"),
            vmem_limit_bytes=vmem_limit,
        ),
        cost_estimate=cost,
    )(v_flat, q_mid, w_img, w1, b1c)

    # back to NCHW: pure reshape.
    return out_flat.reshape(N, G, H, W)


def fusion_reference(v_nchw, q, w_img, w_q, b_q, w1, b1):
    """Pure-JAX reference matching PyTorch semantics (dropout=None)."""
    # img_conv (1x1, no bias): NCHW conv == einsum over channel dim
    v_mid = jnp.einsum("nvhw,mv->nmhw", v_nchw, w_img)
    # ques_linear
    q_mid = q @ w_q.T + b_q                        # (N, mid)
    # tile + relu
    x = jax.nn.relu(v_mid + q_mid[:, :, None, None])
    # conv1 (1x1, with bias)
    out = jnp.einsum("nmhw,gm->nghw", x, w1) + b1[None, :, None, None]
    return out


if __name__ == "__main__":
    # Small shapes consistent with the module:
    #   v: (N, V, H, W), q: (N, Q); mid hidden channels; glimpses output maps.
    N, V, H, W = 2, 4, 16, 16
    Q, MID, GLIMPSES = 32, 32, 2

    key = jax.random.PRNGKey(0)
    k_v, k_q, k_wi, k_wq, k_bq, k_w1, k_b1 = jax.random.split(key, 7)

    v_in = jax.random.normal(k_v, (N, V, H, W), dtype=jnp.float32)
    q_in = jax.random.normal(k_q, (N, Q), dtype=jnp.float32)

    # Deterministic synthetic parameters (shapes follow the PyTorch __init__).
    w_img = jax.random.normal(k_wi, (MID, V), dtype=jnp.float32) * 0.1   # Conv2d(V, MID, 1, bias=False)
    w_q = jax.random.normal(k_wq, (MID, Q), dtype=jnp.float32) * 0.1     # Linear(Q, MID).weight
    b_q = jax.random.normal(k_bq, (MID,), dtype=jnp.float32) * 0.1       # Linear(Q, MID).bias
    w1 = jax.random.normal(k_w1, (GLIMPSES, MID), dtype=jnp.float32) * 0.1  # Conv2d(MID, GLIMPSES, 1).weight
    b1 = jax.random.normal(k_b1, (GLIMPSES,), dtype=jnp.float32) * 0.1      # Conv2d(MID, GLIMPSES, 1).bias

    out = fusion_forward(v_in, q_in, w_img, w_q, b_q, w1, b1)
    out = jax.block_until_ready(out)

    ref = fusion_reference(v_in, q_in, w_img, w_q, b_q, w1, b1)
    assert out.shape == (N, GLIMPSES, H, W), out.shape
    assert jnp.allclose(out, ref, atol=1e-4, rtol=1e-4), "mismatch vs reference"

    print("KERNEL_OK")
</pallas_src>

<mosaic_0001>
module attributes {stable_mosaic.version = 11 : i64} {
  func.func @_fusion_kernel(%arg0: i32, %arg1: i32, %arg2: memref<1x4x256xf32, #tpu.memory_space<vmem>>, %arg3: memref<1x32x1xf32, #tpu.memory_space<vmem>>, %arg4: memref<32x4xf32, #tpu.memory_space<vmem>>, %arg5: memref<2x32xf32, #tpu.memory_space<vmem>>, %arg6: memref<2x1xf32, #tpu.memory_space<vmem>>, %arg7: memref<1x2x256xf32, #tpu.memory_space<vmem>>) attributes {dimension_semantics = [#tpu.dimension_semantics<parallel>, #tpu.dimension_semantics<parallel>], iteration_bounds = array<i64: 2, 1>, scalar_prefetch = 0 : i64, scratch_operands = 0 : i64, tpu.core_type = #tpu.core_type<tc>, window_params = [{transform_indices = @transform_0, window_bounds = array<i64: 1, 4, 256>}, {transform_indices = @transform_1, window_bounds = array<i64: 1, 32, 1>}, {pipeline_mode = #tpu.pipeline_mode<synchronous>, transform_indices = @transform_2, window_bounds = array<i64: 32, 4>}, {pipeline_mode = #tpu.pipeline_mode<synchronous>, transform_indices = @transform_3, window_bounds = array<i64: 2, 32>}, {pipeline_mode = #tpu.pipeline_mode<synchronous>, transform_indices = @transform_4, window_bounds = array<i64: 2, 1>}, {transform_indices = @transform_5, window_bounds = array<i64: 1, 2, 256>}]} {
    %c0 = arith.constant 0 : index
    %c0_0 = arith.constant 0 : index
    %c0_1 = arith.constant 0 : index
    %0 = vector.load %arg2[%c0, %c0_0, %c0_1] : memref<1x4x256xf32, #tpu.memory_space<vmem>>, vector<1x4x256xf32>
    %1 = vector.shape_cast %0 : vector<1x4x256xf32> to vector<4x256xf32>
    %c0_2 = arith.constant 0 : index
    %c0_3 = arith.constant 0 : index
    %2 = vector.load %arg4[%c0_2, %c0_3] : memref<32x4xf32, #tpu.memory_space<vmem>>, vector<32x4xf32>
    %cst = arith.constant dense<0.000000e+00> : vector<32x256xf32>
    %3 = tpu.matmul %2, %1, %cst {dimension_numbers = #tpu.dot_dimension_numbers<[1], [0], [0], [1], [0, 0, 1, 1], [], []>} : vector<32x4xf32>, vector<4x256xf32>, vector<32x256xf32> -> vector<32x256xf32>
    %c0_4 = arith.constant 0 : index
    %c0_5 = arith.constant 0 : index
    %c0_6 = arith.constant 0 : index
    %4 = vector.load %arg3[%c0_4, %c0_5, %c0_6] : memref<1x32x1xf32, #tpu.memory_space<vmem>>, vector<1x32x1xf32>
    %5 = vector.shape_cast %4 : vector<1x32x1xf32> to vector<32x1xf32>
    %6 = vector.broadcast %5 : vector<32x1xf32> to vector<32x256xf32>
    %7 = arith.addf %3, %6 : vector<32x256xf32>
    %cst_7 = arith.constant 0.000000e+00 : f32
    %8 = vector.broadcast %cst_7 : f32 to vector<32x256xf32>
    %9 = arith.maximumf %7, %8 : vector<32x256xf32>
    %c0_8 = arith.constant 0 : index
    %c0_9 = arith.constant 0 : index
    %10 = vector.load %arg5[%c0_8, %c0_9] : memref<2x32xf32, #tpu.memory_space<vmem>>, vector<2x32xf32>
    %cst_10 = arith.constant dense<0.000000e+00> : vector<2x256xf32>
    %11 = tpu.matmul %10, %9, %cst_10 {dimension_numbers = #tpu.dot_dimension_numbers<[1], [0], [0], [1], [0, 0, 1, 1], [], []>} : vector<2x32xf32>, vector<32x256xf32>, vector<2x256xf32> -> vector<2x256xf32>
    %c0_11 = arith.constant 0 : index
    %c0_12 = arith.constant 0 : index
    %12 = vector.load %arg6[%c0_11, %c0_12] : memref<2x1xf32, #tpu.memory_space<vmem>>, vector<2x1xf32>
    %13 = vector.broadcast %12 : vector<2x1xf32> to vector<2x256xf32>
    %14 = arith.addf %11, %13 : vector<2x256xf32>
    %c0_13 = arith.constant 0 : index
    %c0_14 = arith.constant 0 : index
    %c0_15 = arith.constant 0 : index
    %15 = vector.load %arg7[%c0_13, %c0_14, %c0_15] : memref<1x2x256xf32, #tpu.memory_space<vmem>>, vector<1x2x256xf32>
    %16 = vector.shape_cast %15 : vector<1x2x256xf32> to vector<2x256xf32>
    %17 = vector.shape_cast %14 : vector<2x256xf32> to vector<1x2x256xf32>
    tpu.vector_store %arg7[%c0_13, %c0_14, %c0_15], %17 {strides = array<i32>} : memref<1x2x256xf32, #tpu.memory_space<vmem>>, vector<1x2x256xf32>,
    return
  }
  func.func @transform_0(%arg0: i32, %arg1: i32) -> (i32, i32, i32) {
    %c0_i32 = arith.constant 0 : i32
    %c0_i32_0 = arith.constant 0 : i32
    return %arg0, %c0_i32, %arg1 : i32, i32, i32
  }
  func.func @transform_1(%arg0: i32, %arg1: i32) -> (i32, i32, i32) {
    %c0_i32 = arith.constant 0 : i32
    %c0_i32_0 = arith.constant 0 : i32
    %c0_i32_1 = arith.constant 0 : i32
    return %arg0, %c0_i32, %c0_i32_0 : i32, i32, i32
  }
  func.func @transform_2(%arg0: i32, %arg1: i32) -> (i32, i32) {
    %c0_i32 = arith.constant 0 : i32
    %c0_i32_0 = arith.constant 0 : i32
    %c0_i32_1 = arith.constant 0 : i32
    return %c0_i32, %c0_i32_0 : i32, i32
  }
  func.func @transform_3(%arg0: i32, %arg1: i32) -> (i32, i32) {
    %c0_i32 = arith.constant 0 : i32
    %c0_i32_0 = arith.constant 0 : i32
    %c0_i32_1 = arith.constant 0 : i32
    return %c0_i32, %c0_i32_0 : i32, i32
  }
  func.func @transform_4(%arg0: i32, %arg1: i32) -> (i32, i32) {
    %c0_i32 = arith.constant 0 : i32
    %c0_i32_0 = arith.constant 0 : i32
    %c0_i32_1 = arith.constant 0 : i32
    return %c0_i32, %c0_i32_0 : i32, i32
  }
  func.func @transform_5(%arg0: i32, %arg1: i32) -> (i32, i32, i32) {
    %c0_i32 = arith.constant 0 : i32
    %c0_i32_0 = arith.constant 0 : i32
    return %arg0, %c0_i32, %arg1 : i32, i32, i32
  }
}

</mosaic_0001>

<bundles_post_ra>
// kernel: tpu_custom_call.1
= control target key start
LH: loop header
LB: loop body
LE: loop exit
PB: predicated region body
PF: predicated region fallthrough
CT: control target
= control target key end

     0   :  { %10 = vsyncpa [#allocation3], 0  ;;  %s884_s0 = inlined_call_operand.vmem [shape: f32[2,4,256], index: 0, kind: input, shape index: {}]   ;;  %s885_s1 = inlined_call_operand.vmem [shape: f32[2,32,1], index: 1, kind: input, shape index: {}]   ;;  %s886_s2 = inlined_call_operand.vmem [shape: f32[32,4], index: 2, kind: input, shape index: {}]   ;;  %s887_s3 = inlined_call_operand.vmem [shape: f32[2,32], index: 3, kind: input, shape index: {}]   ;;  %s888_s4 = inlined_call_operand.vmem [shape: f32[2,1], index: 4, kind: input, shape index: {}]   ;;  %s889_s5 = inlined_call_operand.hbm [shape: f32[2,2,256], index: 5, kind: output, shape index: {}]  }
   0x1   :  { %12 = vsyncpa [#allocation3 + $0x1], 0  ;;  %s758_s18 = smov 0   ;;  %s760_s19 = smov 0  }
   0x2   :  { %s762_s20 = smov 0   ;;  %s764_s21 = smov 0  }
   0x3   :  { %s766_s22 = smov 0   ;;  %s768_s23 = smov 0  }
   0x4 LB: > { %s556_s24 = sadd.s32 4294967295, %s725_s23   ;;  %s557_s25 = sadd.s32 4294967294, %s725_s23   ;;  %s725_s23 = sphi %s768_s23, %s18_s23   ;;  %s721_s22 = sphi %s766_s22, %s896_s22   ;;  %s717_s21 = sphi %s764_s21, %s895_s21   ;;  %s713_s20 = sphi %s762_s20, %s894_s20   ;;  %s709_s19 = sphi %s760_s19, %s893_s19   ;;  %s705_s18 = sphi %s758_s18, %s892_s18  }
   0x5   : > { %s30_s26 = sadd.s32 1, %s721_s22  ;;  %s156_s27 = sadd.s32 1, %s713_s20 }
   0x6   : > { %p32_p0 = scmp.ge.s32.totalorder %s30_s26, 2  ;;  %p166_p1 = scmp.ne.s32.totalorder %s713_s20, %s709_s19 }
   0x7   : > { %p167_p2 = scmp.eq.s32.totalorder %s556_s24, 1  ;;  %p172_p3 = scmp.ne.s32.totalorder %s709_s19, %s705_s18 }
   0x8   : > { %s898_s26 = smov (%p32_p0, %s30_s26), 0  ;;  %p173_p5 = scmp.eq.s32.totalorder %s557_s25, 1 }
   0x9   : > { %p798_p4 = por %p167_p2, %p166_p1  ;;  %s151_s29 = ssub.s32 %s721_s22, %s898_s26 }
   0xa   : > { %p560_p6 = scmp.ge.s32.totalorder %s725_s23, 1  ;;  %p154_p7 = scmp.eq.s32.totalorder %s151_s29, 0 }
   0xb   : > { %p805_p8 = por %p173_p5, %p172_p3  ;;  %p221_p9 = scmp.lt.s32.totalorder %s725_s23, 3 }
   0xc   : > { %s811_s6 = scalar_select %p154_p7, %s713_s20, %s156_s27  }
   0xd   : > { %p222_p10 = pnand %p560_p6, %p221_p9 }
   0xe   : > { %p259_p11 = scmp.lt.s32.totalorder (!%p222_p10), %s717_s21, 1  ;;  %s255_s13 = sand.u32 (!%p222_p10), 1, %s709_s19  }
   0xf   : > { %225 = sbr.rel (%p222_p10) target bundleno = 326 (0x146), region = 40  ;;  %s561_s14 = sshll.u32 (!%p222_p10), %s255_s13, 2 }
  0x10   : > { %s257_s25 = scalar_lea.vmem (!%p222_p10), [#allocation2], %s561_s14  ;;  %s667_s11 = scalar_lea.hbm (!%p222_p10), %s889_s5, 8 }
  0x11   : > { %s465_s27 = sshll.u32 (!%p222_p10), %s257_s25, 4  ;;  %s466_s27 = int_to_ptr.vmem [resolvable:$true] %s465_s27 }
  0x14   : > { %v727_v0 = vmov 0   ;;  %s260_s7 = scalar_select %p259_p11, %s717_s21, 1  ;;  %vm320_vm0 = vcmask 1043456   ;;  %v275_v4 = vld [vmem:[%s886_s2] sm:$0xff]  ;;  %vm307_vm1 = vcmask 31744   ;;  %v278_v7 = vld [vmem:[%s886_s2 + $0x18] sm:$0xff] }
  0x15   : > { %645 = vset.pattern.permute.xlu1 %v727_v0  ;;  %644 = vset.pattern.permute.xlu0 %v727_v0  ;;  %v276_v10 = vld [vmem:[%s886_s2 + $0x8] sm:$0xff]  ;;  %v277_v11 = vld [vmem:[%s886_s2 + $0x10] sm:$0xff]  ;;  %v392_v12 = vld [vmem:[%s888_s4] sm:$0x3]  ;;  %vm398_vm2 = vcmask 261120   ;;  %vm445_vm3 = vcmask 1041408  }
  0x16   : > { %646 = vset.pattern.permute.xlu2 %v727_v0  ;;  %s583_s8 = sshll.u32 %s260_s7, 3  ;;  %s584_s9 = sshll.u32 %s260_s7, 5  ;;  %v391_v40 = vld [vmem:[%s887_s3] sm:$0x3] }
  0x17   : > { %s266_s12 = scalar_lea.vmem %s884_s0, %s583_s8  ;;  %s272_s15 = scalar_lea.vmem %s885_s1, %s584_s9  ;;  %395 = vperm.xlu2 %646, %v392_v12  }
  0x18   : > { %v274_v1 = vld [vmem:[%s266_s12] sm:$0xff]  ;;  %v280_v2 = vld [vmem:[%s272_s15 + $0x8] sm:$0xff]  ;;  %v282_v3 = vld [vmem:[%s272_s15 + $0x18] sm:$0xff] }
  0x19   : > { %304 = vst [vmem:[#allocation1] ss:$2 sm:$0xff] %v274_v1  ;;  %290 = vperm.xlu1 %645, %v280_v2   ;;  %300 = vperm.xlu0 %644, %v282_v3   ;;  %v279_v8 = vld [vmem:[%s272_s15] sm:$0xff]  ;;  %v281_v9 = vld [vmem:[%s272_s15 + $0x10] sm:$0xff]  ;;  %s585_s15 = sshll.u32 %s717_s21, 2  ;;  %s450_s21 = scalar_lea.sflag [#allocation3], %s255_s13 }
  0x1a   : > { %s463_s24 = scalar_lea.hbm %s889_s5, %s585_s15 }
  0x1b   : > { %s467_s29 = sshll.u32 %s463_s24, 4  ;;  %s468_s29 = int_to_ptr.hbm [resolvable:$true] %s467_s29 }
  0x1c   : > { %s661_s7 = sshra.s32 %s468_s29, 4  ;;  %s662_s7 = int_to_ptr.hbm [resolvable:$true] %s661_s7 }
  0x1d   : > { %s663_s8 = scalar_lea.hbm %s662_s7, 4  ;;  %p668_p1 = scmp.lt.s32.totalorder %s662_s7, %s889_s5 }
  0x1e   : > { %p664_p12 = scmp.ne.s32.totalorder %s662_s7, %s663_s8  ;;  %p669_p2 = scmp.lt.s32.totalorder %s667_s11, %s663_s8 }
  0x20   : > { %v305_v5 = vld.sshfl [vmem:[#allocation1] sm:$0xff pattern:$0x75316420]  ;;  %v306_v6 = vld.sshfl [vmem:[#allocation1 + $0x8] sm:$0xff pattern:$0x75316420]  ;;  %p665_p13 = pnand %p664_p12, %p798_p4  ;;  %p670_p3 = por %p669_p2, %p668_p1 }
  0x21   : > { %566 = vmatpush.msk.msra.mxu0 %vm320_vm0, %v305_v5  ;;  %571 = vmatpush.msk.msra.mxu1 %vm320_vm0, %v306_v6 }
  0x22   : > { %567 = vmatmul.msk.f32.vlgmr.msra.gmra.mxu0 %vm307_vm1, %v275_v4  ;;  %572 = vmatmul.msk.f32.vlgmr.msra.gmra.mxu1 %vm307_vm1, %v275_v4  ;;  %p666_p0 = pneg %p665_p13 }
  0x23   : > { %586 = vmatpush.msk.msra.mxu2 %vm320_vm0, %v305_v5  ;;  %587 = vmatpush.msk.msra.mxu3 %vm320_vm0, %v306_v6 }
  0x24   : > { %570 = vmatmul.msk.f32.vlgmr.msra.gmra.mxu2 %vm307_vm1, %v278_v7  ;;  %575 = vmatmul.msk.f32.vlgmr.msra.gmra.mxu3 %vm307_vm1, %v278_v7  ;;  %p671_p5 = pnand %p670_p3, %p666_p0 }
  0x25   : > { %285 = vperm.xlu1 %645, %v279_v8   ;;  %295 = vperm.xlu0 %644, %v281_v9  }
  0x2a   : > { %568 = vmatmul.msk.f32.gmra.mxu0 %vm307_vm1, %v276_v10  ;;  %573 = vmatmul.msk.f32.gmra.mxu1 %vm307_vm1, %v276_v10 }
  0x32   : > { %569 = vmatmul.msk.f32.gmra.mxu0 %vm307_vm1, %v277_v11  ;;  %574 = vmatmul.msk.f32.gmra.mxu1 %vm307_vm1, %v277_v11 }
  0x71   : > { %v396_v42 = vpop.permute.xlu2 %395 }
  0x8b   : > { %v301_v15 = vpop.permute.xlu0 %300  ;;  %v291_v16 = vpop.permute.xlu1 %290 }
  0x97   : > { %v296_v25 = vpop.permute.xlu0 %295  ;;  %v286_v27 = vpop.permute.xlu1 %285 }
  0x9f   : > { %v342_v13 = vpop.f32.mrf.mxu0  ;;  %v371_v14 = vpop.f32.mrf.mxu1 }
  0xa0   : > { %v343_v33 = vadd.f32 %v342_v13, %v286_v27  ;;  %v372_v35 = vadd.f32 %v371_v14, %v286_v27 }
  0xa2   : > { %v383_v39 = vmax.f32 %v343_v33, 0.0  ;;  %v384_v41 = vmax.f32 %v372_v35, 0.0 }
  0xa7   : > { %v345_v17 = vpop.f32.mrf.mxu0  ;;  %v351_v18 = vpop.f32.mrf.mxu2 }
  0xa8   : > { %v352_v19 = vadd.f32 %v351_v18, %v301_v15  ;;  %v374_v20 = vpop.f32.mrf.mxu1  ;;  %v380_v21 = vpop.f32.mrf.mxu3  ;;  %v346_v28 = vadd.f32 %v345_v17, %v291_v16 }
  0xa9   : > { %v381_v22 = vadd.f32 %v380_v21, %v301_v15  ;;  %v375_v31 = vadd.f32 %v374_v20, %v291_v16 }
  0xaa   : > { %v389_v23 = vmax.f32 %v352_v19, 0.0  ;;  %v385_v37 = vmax.f32 %v346_v28, 0.0 }
  0xab   : > { %v390_v24 = vmax.f32 %v381_v22, 0.0  ;;  %v386_v38 = vmax.f32 %v375_v31, 0.0 }
  0xac   : > { %414 = vmatpush.msrb.mxu2 %v389_v23 }
  0xad   : > { %434 = vmatpush.msrb.mxu3 %v390_v24 }
  0xaf   : > { %v348_v26 = vpop.f32.mrf.mxu0 }
  0xb0   : > { %v349_v29 = vadd.f32 %v348_v26, %v296_v25  ;;  %v377_v30 = vpop.f32.mrf.mxu1 }
  0xb1   : > { %v378_v32 = vadd.f32 %v377_v30, %v296_v25 }
  0xb2   : > { %v387_v34 = vmax.f32 %v349_v29, 0.0 }
  0xb3   : > { %v388_v36 = vmax.f32 %v378_v32, 0.0 }
  0xb4   : > { %415 = vmatpush.msrb.mxu2 %v387_v34 }
  0xb5   : > { %435 = vmatpush.msrb.mxu3 %v388_v36 }
  0xb6   : > { %416 = vmatpush.msrb.mxu2 %v385_v37 }
  0xb7   : > { %436 = vmatpush.msrb.mxu3 %v386_v38 }
  0xb8   : > { %417 = vmatpush.msrb.mxu2 %v383_v39 }
  0xb9   : > { %437 = vmatpush.msrb.mxu3 %v384_v41  ;;  %576 = vmatmul.msk.f32.vlgmr.msrb.gmra.mxu2 %vm398_vm2, %v391_v40 }
  0xba   : > { %577 = vmatmul.msk.f32.vlgmr.msrb.gmra.mxu3 %vm398_vm2, %v391_v40 }
 0x13c   : > { %v419_v44 = vpop.f32.mrf.mxu2 }
 0x13d   : > { %v439_v43 = vpop.f32.mrf.mxu3  ;;  %v420_v47 = vadd.f32 %v419_v44, %v396_v42 }
 0x13e   : > { %v440_v45 = vadd.f32 %v439_v43, %v396_v42 }
 0x140   : > { %v444_v46 = vrot.slane %v440_v45, 6 }
 0x142   : > { %v446_v48 = vsel %vm445_vm3, %v420_v47, %v444_v46 }
 0x143   : > { %448 = vst [vmem:[%s257_s25] sm:$0xf] %v446_v48 }
 0x144   : > { %674 = shalt.err (!%p671_p5)
}
 0x145   : > { %588 = dma.vmem_to_hbm [thread:$0]  (%p798_p4), %s466_s27, 64, %s468_s29, %s450_s21  }
 0x146 PF: > { %p594_p6 = scmp.ge.s32.totalorder %s725_s23, 2  ;;  %s479_s13 = sand.u32 1, %s705_s18  }
 0x147   : > { %s480_s15 = scalar_lea.sflag [#allocation3], %s479_s13 }
 0x148   : > { %p591_p7 = pnand %p594_p6, %p805_p8 }
 0x14a   : > { %p592_p9 = pneg %p591_p7 }
 0x14c   : > { %700 = dma.done.wait (%p592_p9), %s480_s15, 64  }
 0x14d   : > { %702 = vsyncadd (%p592_p9), %s480_s15, 4294967232  ;;  %s18_s23 = sadd.s32 1, %s725_s23   ;;  %s892_s18 = smov %s709_s19 }
 0x14e   : > { %p15_p10 = scmp.ge.s32.totalorder %s18_s23, 4   ;;  %s893_s19 = smov %s713_s20 }
 0x14f   : > { %s894_s20 = smov %s811_s6  ;;  %s895_s21 = smov %s721_s22 }
 0x150   : > { %s896_s22 = smov %s898_s26  ;;  %17 = sbr.rel (!%p15_p10) target bundleno = 4 (0x4), region = 78 }
 0x155   :  { %486 = vsyncpa [#allocation3], 1 }
 0x156   :  { %488 = vsyncpa [#allocation3 + $0x1], 1 }

</bundles_post_ra>
